<compile_context>
chip_gen: v5e
topology: v5e:2x2
jax: 0.10.0
libtpu: 0.0.40
codegen_flags: <defaults>
</compile_context>

<pallas_src>
import jax
import jax.numpy as jnp
from jax.experimental import pallas as pl
from jax.experimental.pallas import tpu as pltpu


def linear_tanh_kernel(x_ref, w_ref, b_ref, o_ref):
    # x: (B, K), w: (K, N), b: (1, N) with const_1 already folded in.
    # Matmul on MXU (f32 acc), fused bias add on VPU, tanh on EUP.
    acc = jnp.dot(x_ref[...], w_ref[...], preferred_element_type=jnp.float32)
    o_ref[...] = jnp.tanh(acc + b_ref[...]).astype(o_ref.dtype)


def init_params(weight, bias, const_1):
    """One-time parameter prep (done at init, NOT per forward call):
    - transpose PyTorch (out, in) weight to (in, out) = (K, N)
    - fold the constant subtraction into the bias: b' = b - const_1
    """
    w_t = jnp.asarray(weight, jnp.float32).T                         # (K, N)
    b_fused = (jnp.asarray(bias, jnp.float32)
               - jnp.float32(const_1)).reshape(1, -1)                # (1, N)
    return w_t, b_fused


def model_forward(x, w_t, b_fused):
    """x: (B, K) f32, w_t: (K, N) f32 (pre-transposed), b_fused: (1, N) f32."""
    B, K = x.shape
    N = w_t.shape[1]
    # Grid-less call: every operand is a single full block resident in VMEM,
    # so there is no pipelining machinery for a one-block problem.
    # (If this layer is hot and weights are static, the next step would be to
    #  keep W resident across calls / fuse into a surrounding kernel.)
    return pl.pallas_call(
        linear_tanh_kernel,
        out_shape=jax.ShapeDtypeStruct((B, N), jnp.float32),
        in_specs=[
            pl.BlockSpec(memory_space=pltpu.MemorySpace.VMEM),  # x
            pl.BlockSpec(memory_space=pltpu.MemorySpace.VMEM),  # w_t
            pl.BlockSpec(memory_space=pltpu.MemorySpace.VMEM),  # b_fused
        ],
        out_specs=pl.BlockSpec(memory_space=pltpu.MemorySpace.VMEM),
    )(x, w_t, b_fused)


if __name__ == "__main__":
    key = jax.random.PRNGKey(0)
    kx, kw, kb = jax.random.split(key, 3)

    IN_FEATURES, OUT_FEATURES, BATCH = 128, 256, 1

    # Deterministic synthetic parameters (nn.Linear-like uniform init),
    # stored in PyTorch layout: weight (out, in), bias (out,).
    bound = 1.0 / (IN_FEATURES ** 0.5)
    weight = jax.random.uniform(kw, (OUT_FEATURES, IN_FEATURES),
                                jnp.float32, -bound, bound)
    bias = jax.random.uniform(kb, (OUT_FEATURES,), jnp.float32, -bound, bound)
    const_1 = 0.32  # self.const_1 (const_2 is unused in forward)

    x1 = jax.random.normal(kx, (BATCH, IN_FEATURES), jnp.float32)

    # One-time init-side prep (pre-transpose + constant folding).
    w_t, b_fused = init_params(weight, bias, const_1)

    out = model_forward(x1, w_t, b_fused)
    out = jax.block_until_ready(out)

    # Reference check in plain JAX against the original module semantics.
    ref = jnp.tanh(x1 @ weight.T + bias - const_1)
    assert out.shape == (BATCH, OUT_FEATURES)
    assert jnp.allclose(out, ref, atol=1e-5, rtol=1e-5)

    print("KERNEL_OK")
</pallas_src>

<mosaic_0001>
module attributes {stable_mosaic.version = 11 : i64} {
  func.func @linear_tanh_kernel(%arg0: memref<1x128xf32, #tpu.memory_space<vmem>>, %arg1: memref<128x256xf32, #tpu.memory_space<vmem>>, %arg2: memref<1x256xf32, #tpu.memory_space<vmem>>, %arg3: memref<1x256xf32, #tpu.memory_space<vmem>>) attributes {dimension_semantics = [], scalar_prefetch = 0 : i64, scratch_operands = 0 : i64, tpu.core_type = #tpu.core_type<tc>} {
    %c0 = arith.constant 0 : index
    %c0_0 = arith.constant 0 : index
    %0 = vector.load %arg0[%c0, %c0_0] : memref<1x128xf32, #tpu.memory_space<vmem>>, vector<1x128xf32>
    %c0_1 = arith.constant 0 : index
    %c0_2 = arith.constant 0 : index
    %1 = vector.load %arg1[%c0_1, %c0_2] : memref<128x256xf32, #tpu.memory_space<vmem>>, vector<128x256xf32>
    %cst = arith.constant dense<0.000000e+00> : vector<1x256xf32>
    %2 = tpu.matmul %0, %1, %cst {dimension_numbers = #tpu.dot_dimension_numbers<[1], [0], [0], [1], [0, 0, 1, 1], [], []>} : vector<1x128xf32>, vector<128x256xf32>, vector<1x256xf32> -> vector<1x256xf32>
    %c0_3 = arith.constant 0 : index
    %c0_4 = arith.constant 0 : index
    %3 = vector.load %arg2[%c0_3, %c0_4] : memref<1x256xf32, #tpu.memory_space<vmem>>, vector<1x256xf32>
    %4 = arith.addf %2, %3 : vector<1x256xf32>
    %5 = math.tanh %4 : vector<1x256xf32>
    %c0_5 = arith.constant 0 : index
    %c0_6 = arith.constant 0 : index
    %6 = vector.load %arg3[%c0_5, %c0_6] : memref<1x256xf32, #tpu.memory_space<vmem>>, vector<1x256xf32>
    tpu.vector_store %arg3[%c0_5, %c0_6], %5 {strides = array<i32>} : memref<1x256xf32, #tpu.memory_space<vmem>>, vector<1x256xf32>,
    return
  }
}

</mosaic_0001>

<bundles_post_ra>
// kernel: tpu_custom_call.1
= control target key start
LH: loop header
LB: loop body
LE: loop exit
PB: predicated region body
PF: predicated region fallthrough
CT: control target
= control target key end

     0   :  { %8 = vsyncpa [#allocation3], 0  ;;  %s318_s0 = inlined_call_operand.hbm [shape: f32[1,128], index: 0, kind: input, shape index: {}]   ;;  %s319_s1 = inlined_call_operand.hbm [shape: f32[128,256], index: 1, kind: input, shape index: {}]   ;;  %s320_s2 = inlined_call_operand.hbm [shape: f32[1,256], index: 2, kind: input, shape index: {}]   ;;  %s321_s3 = inlined_call_operand.hbm [shape: f32[1,256], index: 3, kind: output, shape index: {}]  }
   0x1   :  { %9 = vsyncpa [#allocation6], 0  ;;  %s26_s14 = sshll.u32 %s319_s1, 4  ;;  %s27_s14 = int_to_ptr.hbm [resolvable:$true] %s26_s14 }
   0x2   :  { %10 = vsyncpa [#allocation4], 0  ;;  %s280_s15 = smov [#allocation5]   ;;  %s16_s19 = sshll.u32 %s318_s0, 4  ;;  %s17_s19 = int_to_ptr.hbm [resolvable:$true] %s16_s19 }
   0x3   :  { %s28_s16 = sshll.u32 %s280_s15, 4  ;;  %s281_s20 = smov 256   ;;  %s29_s16 = int_to_ptr.vmem [resolvable:$true] %s28_s16 }
   0x4   :  { %s282_s21 = smov 16   ;;  %s283_s22 = smov [#allocation2]  }
   0x5   :  { %34 = dma.hbm_to_vmem [thread:$0]  %s27_s14, 4096, %s29_s16, [#allocation6], %s281_s20, %s281_s20, %s282_s21  }
   0x6   :  { %s18_s23 = sshll.u32 %s283_s22, 4  ;;  %s40_s26 = sshll.u32 %s320_s2, 4  ;;  %s19_s23 = int_to_ptr.vmem [resolvable:$true] %s18_s23  ;;  %s41_s26 = int_to_ptr.hbm [resolvable:$true] %s40_s26 }
   0x7   :  { %21 = dma.hbm_to_vmem [thread:$0]  %s17_s19, 16, %s19_s23, [#allocation3]  }
   0x8   :  { %s284_s1 = smov [#allocation7]  }
   0x9   :  { %s42_s27 = sshll.u32 %s284_s1, 4  ;;  %s43_s27 = int_to_ptr.vmem [resolvable:$true] %s42_s27 }
   0xa   :  { %45 = dma.hbm_to_vmem [thread:$0]  %s41_s26, 32, %s43_s27, [#allocation6]  }
   0xb   :  { %274 = dma.done.wait [#allocation3], 16  }
   0xc   :  { %275 = vsyncadd [#allocation3], 4294967280 }
   0xd   :  { %276 = dma.done.wait [#allocation6], 4128  }
   0xe   :  { %277 = vsyncadd [#allocation6], 4294963168  ;;  %v90_v0 = vld [vmem:[#allocation5 + $0xf8] sm:$0xff]  ;;  %v89_v1 = vld [vmem:[#allocation5 + $0xf0] sm:$0xff]  ;;  %v145_v40 = vlaneseq  ;;  %s285_s0 = smov [#allocation8]   ;;  %s157_s30 = sshll.u32 %s321_s3, 4  ;;  %s158_s30 = int_to_ptr.hbm [resolvable:$true] %s157_s30 }
   0xf   :  { %v88_v2 = vld [vmem:[#allocation5 + $0xe8] sm:$0xff]  ;;  %117 = vmatpush.msra.mxu1 %v90_v0  ;;  %97 = vmatpush.msra.mxu0 %v89_v1  ;;  %v87_v3 = vld [vmem:[#allocation5 + $0xe0] sm:$0xff]  ;;  %v86_v4 = vld [vmem:[#allocation5 + $0xd8] sm:$0xff]  ;;  %s155_s2 = sshll.u32 %s285_s0, 4  ;;  %vm142_vm0 = vcmask 1040384   ;;  %s156_s2 = int_to_ptr.vmem [resolvable:$true] %s155_s2 }
  0x10   :  { %v85_v5 = vld [vmem:[#allocation5 + $0xd0] sm:$0xff]  ;;  %v84_v6 = vld [vmem:[#allocation5 + $0xc8] sm:$0xff]  ;;  %v83_v7 = vld [vmem:[#allocation5 + $0xc0] sm:$0xff]  ;;  %vm147_vm1 = vcmp.lt.s32.totalorder %v145_v40, 256 }
  0x11   :  { %118 = vmatpush.msra.mxu1 %v88_v2  ;;  %98 = vmatpush.msra.mxu0 %v87_v3  ;;  %v82_v8 = vld [vmem:[#allocation5 + $0xb8] sm:$0xff]  ;;  %v81_v9 = vld [vmem:[#allocation5 + $0xb0] sm:$0xff]  ;;  %v80_v10 = vld [vmem:[#allocation5 + $0xa8] sm:$0xff] }
  0x12   :  { %v79_v11 = vld [vmem:[#allocation5 + $0xa0] sm:$0xff]  ;;  %v78_v12 = vld [vmem:[#allocation5 + $0x98] sm:$0xff]  ;;  %v77_v13 = vld [vmem:[#allocation5 + $0x90] sm:$0xff] }
  0x13   :  { %119 = vmatpush.msra.mxu1 %v86_v4  ;;  %99 = vmatpush.msra.mxu0 %v85_v5  ;;  %v76_v14 = vld [vmem:[#allocation5 + $0x88] sm:$0xff]  ;;  %v75_v15 = vld [vmem:[#allocation5 + $0x80] sm:$0xff]  ;;  %v74_v16 = vld [vmem:[#allocation5 + $0x78] sm:$0xff] }
  0x14   :  { %v73_v17 = vld [vmem:[#allocation5 + $0x70] sm:$0xff]  ;;  %v72_v18 = vld [vmem:[#allocation5 + $0x68] sm:$0xff]  ;;  %v71_v19 = vld [vmem:[#allocation5 + $0x60] sm:$0xff] }
  0x15   :  { %120 = vmatpush.msra.mxu1 %v84_v6  ;;  %100 = vmatpush.msra.mxu0 %v83_v7  ;;  %v70_v20 = vld [vmem:[#allocation5 + $0x58] sm:$0xff]  ;;  %v69_v21 = vld [vmem:[#allocation5 + $0x50] sm:$0xff]  ;;  %v68_v22 = vld [vmem:[#allocation5 + $0x48] sm:$0xff] }
  0x16   :  { %v67_v23 = vld [vmem:[#allocation5 + $0x40] sm:$0xff]  ;;  %v66_v24 = vld [vmem:[#allocation5 + $0x38] sm:$0xff]  ;;  %v65_v25 = vld [vmem:[#allocation5 + $0x30] sm:$0xff] }
  0x17   :  { %121 = vmatpush.msra.mxu1 %v82_v8  ;;  %101 = vmatpush.msra.mxu0 %v81_v9  ;;  %v64_v26 = vld [vmem:[#allocation5 + $0x28] sm:$0xff]  ;;  %v63_v27 = vld [vmem:[#allocation5 + $0x20] sm:$0xff]  ;;  %v62_v28 = vld [vmem:[#allocation5 + $0x18] sm:$0xff] }
  0x18   :  { %v61_v29 = vld [vmem:[#allocation5 + $0x10] sm:$0xff]  ;;  %v60_v30 = vld [vmem:[#allocation5 + $0x8] sm:$0xff]  ;;  %v59_v31 = vld [vmem:[#allocation5] sm:$0xff] }
  0x19   :  { %122 = vmatpush.msra.mxu1 %v80_v10  ;;  %102 = vmatpush.msra.mxu0 %v79_v11  ;;  %v58_v32 = vld [vmem:[#allocation2] sm:$0x1]  ;;  %v91_v33 = vld [vmem:[#allocation7] sm:$0x3] }
  0x1a   :  { %v94_v34 = vperm.slane %v91_v33, 1  ;;  %v93_v35 = vperm.slane %v91_v33, 0 }
  0x1b   :  { %123 = vmatpush.msra.mxu1 %v78_v12  ;;  %103 = vmatpush.msra.mxu0 %v77_v13 }
  0x1d   :  { %124 = vmatpush.msra.mxu1 %v76_v14  ;;  %104 = vmatpush.msra.mxu0 %v75_v15 }
  0x1f   :  { %125 = vmatpush.msra.mxu1 %v74_v16  ;;  %105 = vmatpush.msra.mxu0 %v73_v17 }
  0x21   :  { %126 = vmatpush.msra.mxu1 %v72_v18  ;;  %106 = vmatpush.msra.mxu0 %v71_v19 }
  0x23   :  { %127 = vmatpush.msra.mxu1 %v70_v20  ;;  %107 = vmatpush.msra.mxu0 %v69_v21 }
  0x25   :  { %128 = vmatpush.msra.mxu1 %v68_v22  ;;  %108 = vmatpush.msra.mxu0 %v67_v23 }
  0x27   :  { %129 = vmatpush.msra.mxu1 %v66_v24  ;;  %109 = vmatpush.msra.mxu0 %v65_v25 }
  0x29   :  { %130 = vmatpush.msra.mxu1 %v64_v26  ;;  %110 = vmatpush.msra.mxu0 %v63_v27 }
  0x2b   :  { %131 = vmatpush.msra.mxu1 %v62_v28  ;;  %111 = vmatpush.msra.mxu0 %v61_v29 }
  0x2d   :  { %132 = vmatpush.msra.mxu1 %v60_v30  ;;  %112 = vmatpush.msra.mxu0 %v59_v31 }
  0x2e   :  { %133 = vmatmul.f32.vlgmr.msra.gmra.mxu1 %v58_v32  ;;  %113 = vmatmul.f32.vlgmr.msra.gmra.mxu0 %v58_v32 }
  0xab   :  { %v134_v36 = vpop.f32.mrf.mxu1  ;;  %v114_v37 = vpop.f32.mrf.mxu0 }
  0xac   :  { %v135_v38 = vadd.f32 %v134_v36, %v94_v34  ;;  %v115_v39 = vadd.f32 %v114_v37, %v93_v35 }
  0xae   :  { %174 = vtanh.f32 %v135_v38 }
  0xaf   :  { %176 = vtanh.f32 %v115_v39 }
  0xb4   :  { %v175_v41 = vpop.eup %174 }
  0xb5   :  { %v177_v42 = vpop.eup %176  ;;  %v141_v43 = vrot.slane %v175_v41, 7 }
  0xb7   :  { %v143_v44 = vsel %vm142_vm0, %v177_v42, %v141_v43 }
  0xb8   :  { %149 = vst.msk [vmem:[#allocation8] sm:$0x3] %vm147_vm1, %v143_v44 }
  0xb9   :  { %160 = dma.vmem_to_hbm [thread:$0]  %s156_s2, 32, %s158_s30, [#allocation4]  }
  0xba   :  { %278 = dma.done.wait [#allocation4], 32  }
  0xbb   :  { %279 = vsyncadd [#allocation4], 4294967264 }
  0xbc   :  { %165 = vsyncpa [#allocation3], 1 }
  0xbd   :  { %166 = vsyncpa [#allocation6], 1 }
  0xbe   :  { %167 = vsyncpa [#allocation4], 1 }

</bundles_post_ra>
